<compile_context>
chip_gen: v7x
topology: tpu7x:2x2x1
jax: 0.10.0
libtpu: 0.0.40
codegen_flags: <defaults>
</compile_context>

<pallas_src>
import functools

import jax
import jax.numpy as jnp
import numpy as np
from jax.experimental import pallas as pl
from jax.experimental.pallas import tpu as pltpu


def _round_up(v, m):
    return ((v + m - 1) // m) * m


def _dylr_kernel(x_ref, w_ref, b_ref, aw_ref, pw_ref, o_ref,
                 acc_ref, phi_ref, qf_ref):
    j = pl.program_id(1)          # N (oup) tile index
    k = pl.program_id(2)          # K (inp) tile index
    nk = pl.num_programs(2)
    r2 = phi_ref.shape[1]

    @pl.when(k == 0)
    def _():
        acc_ref[...] = jnp.zeros_like(acc_ref)

    @pl.when((j == 0) & (k == 0))
    def _():
        phi_ref[...] = jnp.zeros_like(phi_ref)
        qf_ref[...] = jnp.zeros_like(qf_ref)

    x = x_ref[...]                                                   # (tm, tk) bf16

    # base linear: accumulate over K ------------------------------------------
    acc_ref[...] += jnp.dot(x, w_ref[...],
                            preferred_element_type=jnp.float32)      # (tm, tn)

    # adapter projections: fused [fc | tiled cls_q] matmul, only once per M
    # tile (computed on the first N tile, cached across the other N tiles).
    @pl.when(j == 0)
    def _():
        pq = jnp.dot(x, aw_ref[...],
                     preferred_element_type=jnp.float32)             # (tm, 2*r2)
        phi_ref[...] += pq[:, :r2]
        qf_ref[...] += pq[:, r2:]

    @pl.when(k == nk - 1)
    def _():
        # (phi * q_tiled) @ repeat(P.T, r)  ==  (phi @ q) @ P.T   (exact fold)
        yq = (phi_ref[...] * qf_ref[...]).astype(pw_ref.dtype)       # (tm, r2)
        shift = jnp.dot(yq, pw_ref[...],
                        preferred_element_type=jnp.float32)          # (tm, tn)
        o_ref[...] = (acc_ref[...] + b_ref[...] + shift).astype(o_ref.dtype)


def prepare_params(weight, bias, fc_w, cls_q_w, cls_p_w, rank,
                   compute_dtype=jnp.bfloat16):
    """One-time weight transform (do NOT call per forward pass).

    Weights arrive in PyTorch nn.Linear convention (out_features, in_features).
    """
    oup, inp = weight.shape
    r2 = rank * rank
    oup_pad = _round_up(oup, 128)              # lane-dense output stores

    # K tiling: single K tile whenever inp <= 2048 (no redundant refetch of
    # x / adapter blocks across N tiles); else 1024-wide K tiles.
    if inp <= 2048:
        k_pad = _round_up(inp, 8)
        tk = k_pad
    else:
        tk = 1024
        k_pad = _round_up(inp, tk)
    del tk  # forward re-derives the same tk from k_pad

    w_t = jnp.asarray(weight).T                               # (inp, oup)
    fc_t = jnp.asarray(fc_w).T                                # (inp, r*r)
    # tile cls_q so column i*r+j of (x @ qw_tiled) equals q[:, j]
    qw_tiled = jnp.tile(jnp.asarray(cls_q_w).T, (1, rank))    # (inp, r*r)
    # fuse both adapter projections into one matmul operand
    adapter_w = jnp.concatenate([fc_t, qw_tiled], axis=1)     # (inp, 2*r*r)
    # repeat rows of cls_p.T so (phi * q_tiled) @ p_exp == (phi @ q) @ cls_p.T
    p_exp = jnp.repeat(jnp.asarray(cls_p_w).T, rank, axis=0)  # (r*r, oup)
    b = jnp.asarray(bias)

    if oup_pad != oup:
        w_t = jnp.pad(w_t, ((0, 0), (0, oup_pad - oup)))
        p_exp = jnp.pad(p_exp, ((0, 0), (0, oup_pad - oup)))
        b = jnp.pad(b, (0, oup_pad - oup))
    if k_pad != inp:
        w_t = jnp.pad(w_t, ((0, k_pad - inp), (0, 0)))
        adapter_w = jnp.pad(adapter_w, ((0, k_pad - inp), (0, 0)))

    return dict(
        w_t=w_t.astype(compute_dtype),                  # (k_pad, oup_pad)
        bias2d=b.reshape(1, oup_pad).astype(jnp.float32),
        adapter_w=adapter_w.astype(compute_dtype),      # (k_pad, 2*r2)
        p_exp=p_exp.astype(compute_dtype),              # (r2, oup_pad)
        oup=oup,
        inp=inp,
    )


@functools.partial(jax.jit, static_argnames=("oup",))
def _dylr_forward(x, w_t, bias2d, adapter_w, p_exp, *, oup):
    batch, seq, inp = x.shape
    k_pad, oup_pad = w_t.shape
    r2 = p_exp.shape[0]
    compute_dtype = w_t.dtype

    # --- tile selection (static; mirrors prepare_params) ---------------------
    M = batch * seq
    num_m = -(-M // 256)                       # M tiles of at most 256 rows
    tm = _round_up(-(-M // num_m), 8)          # minimize padded rows
    m_pad = _round_up(M, tm)
    tn = 256 if oup_pad % 256 == 0 else 128    # must divide oup_pad exactly
    tk = k_pad if k_pad <= 2048 else 1024      # matches prepare_params

    x2 = x.reshape(M, inp).astype(compute_dtype)
    if m_pad != M or k_pad != inp:
        x2 = jnp.pad(x2, ((0, m_pad - M), (0, k_pad - inp)))

    grid = (m_pad // tm, oup_pad // tn, k_pad // tk)

    # Explicit VMEM budget: double-buffered blocks + f32 scratch, with margin.
    bpe = jnp.dtype(compute_dtype).itemsize
    obpe = jnp.dtype(x.dtype).itemsize
    est = 2 * (tm * tk * bpe + tk * tn * bpe + tn * 4
               + tk * 2 * r2 * bpe + r2 * tn * bpe + tm * tn * obpe)
    est += tm * tn * 4 + 2 * tm * r2 * 4
    vmem_limit = int(min(max(3 * est + (4 << 20), 16 << 20), 40 << 20))

    out = pl.pallas_call(
        _dylr_kernel,
        out_shape=jax.ShapeDtypeStruct((m_pad, oup_pad), x.dtype),
        grid_spec=pltpu.PrefetchScalarGridSpec(
            num_scalar_prefetch=0,
            grid=grid,
            in_specs=[
                pl.BlockSpec((tm, tk), lambda i, j, k: (i, k)),       # x tile
                pl.BlockSpec((tk, tn), lambda i, j, k: (k, j)),       # main weight
                pl.BlockSpec((1, tn), lambda i, j, k: (0, j)),        # bias
                pl.BlockSpec((tk, 2 * r2), lambda i, j, k: (k, 0)),   # [fc | q] fused
                pl.BlockSpec((r2, tn), lambda i, j, k: (0, j)),       # cls_p expanded
            ],
            out_specs=pl.BlockSpec((tm, tn), lambda i, j, k: (i, j)),
            scratch_shapes=[
                pltpu.VMEM((tm, tn), jnp.float32),   # base accumulator
                pltpu.VMEM((tm, r2), jnp.float32),   # phi (cached across j)
                pltpu.VMEM((tm, r2), jnp.float32),   # q tiled (cached across j)
            ],
        ),
        compiler_params=pltpu.CompilerParams(
            # j must be "arbitrary": phi/qf scratch carries across N tiles.
            dimension_semantics=("parallel", "arbitrary", "arbitrary"),
            vmem_limit_bytes=vmem_limit,
        ),
    )(x2, w_t, bias2d, adapter_w, p_exp)

    return out[:M, :oup].reshape(batch, seq, oup)


def dylr_linear(x, params):
    """x: (batch, seq, inp) in f32/bf16; params from prepare_params()."""
    return _dylr_forward(x, params["w_t"], params["bias2d"],
                         params["adapter_w"], params["p_exp"],
                         oup=params["oup"])


def _reference(x, weight, bias, fc_w, cls_q_w, cls_p_w, rank):
    """Pure-JAX f32 replica of the PyTorch forward for verification."""
    b, s, _ = x.shape
    phi = (x @ fc_w.T).reshape(b, s, rank, rank)
    q = x @ cls_q_w.T                                          # (b, s, r)
    y = jnp.einsum("bsij,bsj->bsi", phi, q)                    # (b, s, r)
    shift = y @ cls_p_w.T                                      # (b, s, oup)
    base = x @ weight.T + bias
    return base + shift


if __name__ == "__main__":
    batch, seq, inp, oup, rank = 2, 8, 32, 32, 4

    key = jax.random.PRNGKey(0)
    k_x, k_w, k_fc, k_q, k_p = jax.random.split(key, 5)

    x = jax.random.normal(k_x, (batch, seq, inp), dtype=jnp.float32)

    # deterministic parameter init (matching declared shapes of the module)
    weight = 0.02 * jax.random.normal(k_w, (oup, inp), dtype=jnp.float32)
    bias = jnp.zeros((oup,), dtype=jnp.float32)
    fc_w = 0.05 * jax.random.normal(k_fc, (rank * rank, inp), dtype=jnp.float32)
    cls_q_w = 0.05 * jax.random.normal(k_q, (rank, inp), dtype=jnp.float32)
    cls_p_w = 0.05 * jax.random.normal(k_p, (oup, rank), dtype=jnp.float32)

    params = prepare_params(weight, bias, fc_w, cls_q_w, cls_p_w, rank,
                            compute_dtype=jnp.bfloat16)

    out = dylr_linear(x, params)
    out = jax.block_until_ready(out)

    ref = _reference(x, weight, bias, fc_w, cls_q_w, cls_p_w, rank)
    # bf16 MXU inputs with f32 accumulation -> loosen tolerance vs f32 ref.
    np.testing.assert_allclose(np.asarray(out), np.asarray(ref),
                               rtol=5e-2, atol=1e-2)

    print("KERNEL_OK")
</pallas_src>

<mosaic_0001>
module attributes {stable_mosaic.version = 11 : i64} {
  func.func @_dylr_kernel(%arg0: i32, %arg1: i32, %arg2: i32, %arg3: memref<16x32xbf16, #tpu.memory_space<vmem>>, %arg4: memref<32x128xbf16, #tpu.memory_space<vmem>>, %arg5: memref<1x128xf32, #tpu.memory_space<vmem>>, %arg6: memref<32x32xbf16, #tpu.memory_space<vmem>>, %arg7: memref<16x128xbf16, #tpu.memory_space<vmem>>, %arg8: memref<16x128xf32, #tpu.memory_space<vmem>>, %arg9: memref<16x128xf32, #tpu.memory_space<vmem>>, %arg10: memref<16x16xf32, #tpu.memory_space<vmem>>, %arg11: memref<16x16xf32, #tpu.memory_space<vmem>>) attributes {dimension_semantics = [#tpu.dimension_semantics<parallel>, #tpu.dimension_semantics<arbitrary>, #tpu.dimension_semantics<arbitrary>], iteration_bounds = array<i64: 1, 1, 1>, scalar_prefetch = 0 : i64, scratch_operands = 3 : i64, tpu.core_type = #tpu.core_type<tc>, window_params = [{transform_indices = @transform_0, window_bounds = array<i64: 16, 32>}, {transform_indices = @transform_1, window_bounds = array<i64: 32, 128>}, {transform_indices = @transform_2, window_bounds = array<i64: 1, 128>}, {transform_indices = @transform_3, window_bounds = array<i64: 32, 32>}, {transform_indices = @transform_4, window_bounds = array<i64: 16, 128>}, {transform_indices = @transform_5, window_bounds = array<i64: 16, 128>}]} {
    %c0_i32 = arith.constant 0 : i32
    %0 = arith.cmpi eq, %arg2, %c0_i32 : i32
    %1 = arith.extui %0 : i1 to i32
    %c0_i32_0 = arith.constant 0 : i32
    %2 = arith.cmpi ne, %1, %c0_i32_0 : i32
    scf.if %2 {
      %cst_15 = arith.constant 0.000000e+00 : f32
      %20 = vector.broadcast %cst_15 : f32 to vector<16x128xf32>
      %c0_16 = arith.constant 0 : index
      %c0_17 = arith.constant 0 : index
      %21 = vector.load %arg9[%c0_16, %c0_17] : memref<16x128xf32, #tpu.memory_space<vmem>>, vector<16x128xf32>
      tpu.vector_store %arg9[%c0_16, %c0_17], %20 {strides = array<i32>} : memref<16x128xf32, #tpu.memory_space<vmem>>, vector<16x128xf32>,
    } else {
    }
    %c0_i32_1 = arith.constant 0 : i32
    %3 = arith.cmpi eq, %arg1, %c0_i32_1 : i32
    %c0_i32_2 = arith.constant 0 : i32
    %4 = arith.cmpi eq, %arg2, %c0_i32_2 : i32
    %5 = arith.andi %3, %4 : i1
    %6 = arith.extui %5 : i1 to i32
    %c0_i32_3 = arith.constant 0 : i32
    %7 = arith.cmpi ne, %6, %c0_i32_3 : i32
    scf.if %7 {
      %cst_15 = arith.constant 0.000000e+00 : f32
      %20 = vector.broadcast %cst_15 : f32 to vector<16x16xf32>
      %c0_16 = arith.constant 0 : index
      %c0_17 = arith.constant 0 : index
      %21 = vector.load %arg10[%c0_16, %c0_17] : memref<16x16xf32, #tpu.memory_space<vmem>>, vector<16x16xf32>
      tpu.vector_store %arg10[%c0_16, %c0_17], %20 {strides = array<i32>} : memref<16x16xf32, #tpu.memory_space<vmem>>, vector<16x16xf32>,
      %cst_18 = arith.constant 0.000000e+00 : f32
      %22 = vector.broadcast %cst_18 : f32 to vector<16x16xf32>
      %c0_19 = arith.constant 0 : index
      %c0_20 = arith.constant 0 : index
      %23 = vector.load %arg11[%c0_19, %c0_20] : memref<16x16xf32, #tpu.memory_space<vmem>>, vector<16x16xf32>
      tpu.vector_store %arg11[%c0_19, %c0_20], %22 {strides = array<i32>} : memref<16x16xf32, #tpu.memory_space<vmem>>, vector<16x16xf32>,
    } else {
    }
    %c0 = arith.constant 0 : index
    %c0_4 = arith.constant 0 : index
    %8 = vector.load %arg3[%c0, %c0_4] : memref<16x32xbf16, #tpu.memory_space<vmem>>, vector<16x32xbf16>
    %c0_5 = arith.constant 0 : index
    %c0_6 = arith.constant 0 : index
    %9 = vector.load %arg9[%c0_5, %c0_6] : memref<16x128xf32, #tpu.memory_space<vmem>>, vector<16x128xf32>
    %c0_7 = arith.constant 0 : index
    %c0_8 = arith.constant 0 : index
    %10 = vector.load %arg4[%c0_7, %c0_8] : memref<32x128xbf16, #tpu.memory_space<vmem>>, vector<32x128xbf16>
    %cst = arith.constant dense<0.000000e+00> : vector<16x128xf32>
    %11 = tpu.matmul %8, %10, %cst {dimension_numbers = #tpu.dot_dimension_numbers<[1], [0], [0], [1], [0, 0, 1, 1], [], []>} : vector<16x32xbf16>, vector<32x128xbf16>, vector<16x128xf32> -> vector<16x128xf32>
    %12 = arith.addf %9, %11 : vector<16x128xf32>
    %c0_9 = arith.constant 0 : index
    %c0_10 = arith.constant 0 : index
    %13 = vector.load %arg9[%c0_9, %c0_10] : memref<16x128xf32, #tpu.memory_space<vmem>>, vector<16x128xf32>
    tpu.vector_store %arg9[%c0_9, %c0_10], %12 {strides = array<i32>} : memref<16x128xf32, #tpu.memory_space<vmem>>, vector<16x128xf32>,
    %c0_i32_11 = arith.constant 0 : i32
    %14 = arith.cmpi eq, %arg1, %c0_i32_11 : i32
    %15 = arith.extui %14 : i1 to i32
    %c0_i32_12 = arith.constant 0 : i32
    %16 = arith.cmpi ne, %15, %c0_i32_12 : i32
    scf.if %16 {
      %c0_15 = arith.constant 0 : index
      %c0_16 = arith.constant 0 : index
      %20 = vector.load %arg6[%c0_15, %c0_16] : memref<32x32xbf16, #tpu.memory_space<vmem>>, vector<32x32xbf16>
      %cst_17 = arith.constant dense<0.000000e+00> : vector<16x32xf32>
      %21 = tpu.matmul %8, %20, %cst_17 {dimension_numbers = #tpu.dot_dimension_numbers<[1], [0], [0], [1], [0, 0, 1, 1], [], []>} : vector<16x32xbf16>, vector<32x32xbf16>, vector<16x32xf32> -> vector<16x32xf32>
      %c0_18 = arith.constant 0 : index
      %c0_19 = arith.constant 0 : index
      %22 = vector.load %arg10[%c0_18, %c0_19] : memref<16x16xf32, #tpu.memory_space<vmem>>, vector<16x16xf32>
      %23 = vector.extract_strided_slice %21 {offsets = [0, 0], sizes = [16, 16], strides = [1, 1]} : vector<16x32xf32> to vector<16x16xf32>
      %24 = arith.addf %22, %23 : vector<16x16xf32>
      %c0_20 = arith.constant 0 : index
      %c0_21 = arith.constant 0 : index
      %25 = vector.load %arg10[%c0_20, %c0_21] : memref<16x16xf32, #tpu.memory_space<vmem>>, vector<16x16xf32>
      tpu.vector_store %arg10[%c0_20, %c0_21], %24 {strides = array<i32>} : memref<16x16xf32, #tpu.memory_space<vmem>>, vector<16x16xf32>,
      %c0_22 = arith.constant 0 : index
      %c0_23 = arith.constant 0 : index
      %26 = vector.load %arg11[%c0_22, %c0_23] : memref<16x16xf32, #tpu.memory_space<vmem>>, vector<16x16xf32>
      %27 = vector.extract_strided_slice %21 {offsets = [0, 16], sizes = [16, 16], strides = [1, 1]} : vector<16x32xf32> to vector<16x16xf32>
      %28 = arith.addf %26, %27 : vector<16x16xf32>
      %c0_24 = arith.constant 0 : index
      %c0_25 = arith.constant 0 : index
      %29 = vector.load %arg11[%c0_24, %c0_25] : memref<16x16xf32, #tpu.memory_space<vmem>>, vector<16x16xf32>
      tpu.vector_store %arg11[%c0_24, %c0_25], %28 {strides = array<i32>} : memref<16x16xf32, #tpu.memory_space<vmem>>, vector<16x16xf32>,
    } else {
    }
    %c0_i32_13 = arith.constant 0 : i32
    %17 = arith.cmpi eq, %arg2, %c0_i32_13 : i32
    %18 = arith.extui %17 : i1 to i32
    %c0_i32_14 = arith.constant 0 : i32
    %19 = arith.cmpi ne, %18, %c0_i32_14 : i32
    scf.if %19 {
      %c0_15 = arith.constant 0 : index
      %c0_16 = arith.constant 0 : index
      %20 = vector.load %arg10[%c0_15, %c0_16] : memref<16x16xf32, #tpu.memory_space<vmem>>, vector<16x16xf32>
      %c0_17 = arith.constant 0 : index
      %c0_18 = arith.constant 0 : index
      %21 = vector.load %arg11[%c0_17, %c0_18] : memref<16x16xf32, #tpu.memory_space<vmem>>, vector<16x16xf32>
      %22 = arith.mulf %20, %21 : vector<16x16xf32>
      %23 = arith.truncf %22 : vector<16x16xf32> to vector<16x16xbf16>
      %c0_19 = arith.constant 0 : index
      %c0_20 = arith.constant 0 : index
      %24 = vector.load %arg7[%c0_19, %c0_20] : memref<16x128xbf16, #tpu.memory_space<vmem>>, vector<16x128xbf16>
      %cst_21 = arith.constant dense<0.000000e+00> : vector<16x128xf32>
      %25 = tpu.matmul %23, %24, %cst_21 {dimension_numbers = #tpu.dot_dimension_numbers<[1], [0], [0], [1], [0, 0, 1, 1], [], []>} : vector<16x16xbf16>, vector<16x128xbf16>, vector<16x128xf32> -> vector<16x128xf32>
      %c0_22 = arith.constant 0 : index
      %c0_23 = arith.constant 0 : index
      %26 = vector.load %arg9[%c0_22, %c0_23] : memref<16x128xf32, #tpu.memory_space<vmem>>, vector<16x128xf32>
      %c0_24 = arith.constant 0 : index
      %c0_25 = arith.constant 0 : index
      %27 = vector.load %arg5[%c0_24, %c0_25] : memref<1x128xf32, #tpu.memory_space<vmem>>, vector<1x128xf32>
      %28 = vector.broadcast %27 : vector<1x128xf32> to vector<16x128xf32>
      %29 = arith.addf %26, %28 : vector<16x128xf32>
      %30 = arith.addf %29, %25 : vector<16x128xf32>
      %c0_26 = arith.constant 0 : index
      %c0_27 = arith.constant 0 : index
      %31 = vector.load %arg8[%c0_26, %c0_27] : memref<16x128xf32, #tpu.memory_space<vmem>>, vector<16x128xf32>
      tpu.vector_store %arg8[%c0_26, %c0_27], %30 {strides = array<i32>} : memref<16x128xf32, #tpu.memory_space<vmem>>, vector<16x128xf32>,
    } else {
    }
    return
  }
  func.func @transform_0(%arg0: i32, %arg1: i32, %arg2: i32) -> (i32, i32) {
    %c0_i32 = arith.constant 0 : i32
    return %arg0, %arg2 : i32, i32
  }
  func.func @transform_1(%arg0: i32, %arg1: i32, %arg2: i32) -> (i32, i32) {
    %c0_i32 = arith.constant 0 : i32
    return %arg2, %arg1 : i32, i32
  }
  func.func @transform_2(%arg0: i32, %arg1: i32, %arg2: i32) -> (i32, i32) {
    %c0_i32 = arith.constant 0 : i32
    %c0_i32_0 = arith.constant 0 : i32
    return %c0_i32, %arg1 : i32, i32
  }
  func.func @transform_3(%arg0: i32, %arg1: i32, %arg2: i32) -> (i32, i32) {
    %c0_i32 = arith.constant 0 : i32
    %c0_i32_0 = arith.constant 0 : i32
    return %arg2, %c0_i32 : i32, i32
  }
  func.func @transform_4(%arg0: i32, %arg1: i32, %arg2: i32) -> (i32, i32) {
    %c0_i32 = arith.constant 0 : i32
    %c0_i32_0 = arith.constant 0 : i32
    return %c0_i32, %arg1 : i32, i32
  }
  func.func @transform_5(%arg0: i32, %arg1: i32, %arg2: i32) -> (i32, i32) {
    %c0_i32 = arith.constant 0 : i32
    return %arg0, %arg1 : i32, i32
  }
}

</mosaic_0001>

<bundles_post_ra>
// kernel: _dylr_forward.1
= control target key start
LH: loop header
LB: loop body
LE: loop exit
PB: predicated region body
PF: predicated region fallthrough
CT: control target
= control target key end

     0   :  { %10 = vsyncpa [#allocation6], 0  ;;  %s371_s18 = smov [#allocation5]   ;;  %s455_s0 = inlined_call_operand.vmem [shape: bf16[16,32], index: 0, kind: input, shape index: {}]   ;;  %s456_s1 = inlined_call_operand.vmem [shape: bf16[32,128], index: 1, kind: input, shape index: {}]   ;;  %s457_s2 = inlined_call_operand.vmem [shape: f32[1,128], index: 2, kind: input, shape index: {}]   ;;  %s458_s3 = inlined_call_operand.vmem [shape: bf16[32,32], index: 3, kind: input, shape index: {}]   ;;  %s459_s4 = inlined_call_operand.hbm [shape: bf16[16,128], index: 4, kind: input, shape index: {}]   ;;  %s460_s5 = inlined_call_operand.vmem [shape: f32[16,128], index: 5, kind: output, shape index: {}]  }
   0x1   :  { %s24_s19 = sshll.u32 %s371_s18, 4  ;;  %s347_s22 = scalar_lea.hbm %s459_s4, 128  ;;  %s25_s19 = int_to_ptr.vmem [resolvable:$true] %s24_s19 }
   0x2   :  { %p348_p0 = scmp.ne.s32.totalorder %s459_s4, %s347_s22  ;;  %p351_p1 = scmp.lt.u32.totalorder %s347_s22, %s459_s4 }
   0x4   :  { %p353_p2 = pnand %p351_p1, %p348_p0 }
   0x6   :  { %356 = shalt.err (!%p353_p2)
}
   0x7   :  { %s357_s27 = scalar_lea.vmem %s25_s19, 128  ;;  %p362_p4 = scmp.lt.s32.totalorder %s25_s19, %s25_s19 }
   0x8   :  { %p358_p3 = scmp.ne.s32.totalorder %s25_s19, %s357_s27  ;;  %p363_p5 = scmp.lt.s32.totalorder %s357_s27, %s357_s27 }
   0xa   :  { %p364_p6 = por %p363_p5, %p362_p4 }
   0xc   :  { %p365_p7 = pnand %p364_p6, %p358_p3 }
   0xe   :  { %368 = shalt.err (!%p365_p7)
}
   0xf   :  { %s372_s28 = smov 64   ;;  %s373_s29 = smov 4  }
  0x10   :  { %30 = dma.hbm_to_vmem [thread:$0]  %s459_s4, 128, %s25_s19, [#allocation6], %s372_s28, %s372_s28, %s373_s29  }
  0x11   :  { %369 = dma.done.wait [#allocation6], 128  }
  0x12   :  { %370 = vsyncadd [#allocation6], 4294967168  ;;  %vm46_vm0 = vcmask 130048   ;;  %v374_v0 = vmov 0.0   ;;  %vm375_vm1 = vmmov 0   ;;  %v341_v1 = vld [vmem:[%s458_s3] sm:$0xff]  }
  0x13   :  { %315 = vmatprep.subr.bf16.mxu1 %v374_v0  ;;  %319 = vmatprep.mubr.msk.bf16.mxu1 %vm375_vm1, %v374_v0  ;;  %47 = vst.msk [vmem:[#allocation3] sm:$0xff] %vm46_vm0, %v374_v0  ;;  %48 = vst.msk [vmem:[#allocation3 + $0x8] sm:$0xff] %vm46_vm0, %v374_v0  ;;  %v342_v2 = vld [vmem:[%s458_s3 + $0x8] sm:$0xff]   ;;  %v343_v3 = vld [vmem:[%s455_s0] sm:$0xff]   ;;  %vm76_vm2 = vcmask 261120   ;;  %s376_s0 = smov 112  }
  0x14   :  { %49 = vst.msk [vmem:[#allocation4] sm:$0xff] %vm46_vm0, %v374_v0  ;;  %50 = vst.msk [vmem:[#allocation4 + $0x8] sm:$0xff] %vm46_vm0, %v374_v0  ;;  %307 = vmatprep.subr.bf16.mxu0 %v374_v0  ;;  %311 = vmatprep.mubr.msk.bf16.mxu0 %vm375_vm1, %v374_v0  ;;  %v344_v4 = vld [vmem:[%s456_s1] sm:$0xff]   ;;  %v345_v5 = vld [vmem:[%s456_s1 + $0x8] sm:$0xff]  }
  0x15   :  { %316 = vmatpush3.bf16.msra.mxu1 %v341_v1  ;;  %308 = vmatpush3.bf16.msra.mxu0 %v344_v4  ;;  %v346_v6 = vld [vmem:[#allocation5] sm:$0xff]  }
  0x16   :  { %317 = vmatprep.subr.bf16.mxu1 %v374_v0  ;;  %309 = vmatprep.subr.bf16.mxu0 %v374_v0  ;;  %v298_v28 = vld [vmem:[%s457_s2] ss:$0 sm:$0xff] }
  0x19   :  { %318 = vmatpush3.bf16.msra.mxu1 %v342_v2  ;;  %310 = vmatpush3.bf16.msra.mxu0 %v345_v5 }
  0x1a   :  { %323 = vmatprep.subr.bf16.mxu0 %v374_v0  ;;  %v185_v7 = vld [vmem:[#allocation3] sm:$0xff]  ;;  %v186_v9 = vld [vmem:[#allocation3 + $0x8] sm:$0xff] }
  0x1b   :  { %v192_v15 = vld [vmem:[#allocation4] sm:$0xff]  ;;  %v193_v18 = vld [vmem:[#allocation4 + $0x8] sm:$0xff] }
  0x1c   :  { %320 = vmatmul.mubr.msk.bf16.vlgmr.msra.gmra.mrb[0].mxu1 %vm76_vm2, %v343_v3  ;;  %312 = vmatmul.mubr.msk.bf16.vlgmr.msra.gmra.mrb[0].mxu0 %vm76_vm2, %v343_v3 }
  0x1d   :  { %325 = vmatprep.mubr.msk.bf16.mxu0 %vm375_vm1, %v374_v0  ;;  %324 = vmatpush3.bf16.msra.mxu0 %v346_v6 }
  0xef   :  { %v178_v8 = vpop.f32.mrb[0].mxu1 }
  0xf0   :  { %v187_v10 = vadd.f32 %v185_v7, %v178_v8  ;;  %196 = vrot.lane.b32.xlu0 %v178_v8, %s376_s0  ;;  %v321_v11 = vpop.f32.mrb[1].mxu1 }
  0xf1   :  { %v181_v12 = vpop.f32.mrb[2].mxu1 }
  0xf2   :  { %190 = vst.msk [vmem:[#allocation3] sm:$0xff] %vm46_vm0, %v187_v10  ;;  %v188_v13 = vadd.f32 %v186_v9, %v181_v12  ;;  %v322_v14 = vpop.f32.mrb[3].mxu1 }
  0xf4   :  { %191 = vst.msk [vmem:[#allocation3 + $0x8] sm:$0xff] %vm46_vm0, %v188_v13  ;;  %198 = vrot.lane.b32.xlu0 %v181_v12, %s376_s0 }
  0xf9   :  { %v209_v22 = vld [vmem:[#allocation3] sm:$0xff] }
  0xfb   :  { %v210_v23 = vld [vmem:[#allocation3 + $0x8] sm:$0xff] }
 0x162   :  { %v197_v16 = vpop.permute.xlu0 %196 }
 0x163   :  { %v202_v17 = vadd.f32 %v197_v16, %v192_v15 }
 0x165   :  { %204 = vst.msk [vmem:[#allocation4] sm:$0xff] %vm46_vm0, %v202_v17 }
 0x166   :  { %v199_v19 = vpop.permute.xlu0 %198 }
 0x167   :  { %v203_v20 = vadd.f32 %v199_v19, %v193_v18 }
 0x169   :  { %205 = vst.msk [vmem:[#allocation4 + $0x8] sm:$0xff] %vm46_vm0, %v203_v20 }
 0x16c   :  { %v211_v21 = vld [vmem:[#allocation4] sm:$0xff] }
 0x16d   :  { %v213_v25 = vmul.f32 %v211_v21, %v209_v22 }
 0x170   :  { %v212_v24 = vld [vmem:[#allocation4 + $0x8] sm:$0xff] }
 0x171   :  { %v214_v26 = vmul.f32 %v212_v24, %v210_v23 }
 0x173   :  { %v215_v27 = vpack.c.bf16 %v214_v26, %v213_v25 }
 0x175   :  { %326 = vmatmul.mubr.msk.bf16.vlgmr.msra.gmra.mrb[0].mxu0 %vm46_vm0, %v215_v27 }
 0x248   :  { %v262_v29 = vpop.f32.mrb[0].mxu0 }
 0x249   :  { %v329_v30 = vadd.f32 %v298_v28, %v262_v29  ;;  %v327_v31 = vpop.f32.mrb[1].mxu0 }
 0x24a   :  { %v265_v32 = vpop.f32.mrb[2].mxu0 }
 0x24b   :  { %282 = vst [vmem:[%s460_s5] sm:$0xff] %v329_v30  ;;  %v330_v33 = vadd.f32 %v298_v28, %v265_v32  ;;  %v328_v34 = vpop.f32.mrb[3].mxu0 }
 0x24d   :  { %283 = vst [vmem:[%s460_s5 + $0x8] sm:$0xff] %v330_v33 }
 0x24e   :  { %288 = vsyncpa [#allocation6], 1 }

</bundles_post_ra>
